<compile_context>
chip_gen: v6e
topology: v6e:2x2x1
jax: 0.10.0
libtpu: 0.0.40
codegen_flags: <defaults>
</compile_context>

<pallas_src>
import jax
import jax.numpy as jnp
from jax import lax
from jax.experimental import pallas as pl
from jax.experimental.pallas import tpu as pltpu

LEAKY_SLOPE = 0.2
BN_EPS = 1e-5


def _round_up(x, m):
    return (x + m - 1) // m * m


# --------------------------------------------------------------------------
# Pallas kernel factory: fused concat + (conv3x3 -> BN -> LReLU) x 2
# --------------------------------------------------------------------------
def _make_up_doubleconv_kernel(H, W, C2, C1, Cin, Cin_p, Cmid_p, Cout, halo,
                               compute_dtype):
    HW = H * W
    width = 2 * halo + HW

    def kernel(col_ref, x2_ref, x1_ref, w1_ref, s1_ref, t1_ref,
               w2_ref, s2_ref, t2_ref, out_ref, buf_ref):
        col = col_ref[...]                                 # (1, HW) int32

        rows = buf_ref.shape[0]
        # Zero the lane-aligned halos (aligned, unmasked stores).
        buf_ref[:, 0:halo] = jnp.zeros((rows, halo), jnp.float32)
        buf_ref[:, halo + HW:] = jnp.zeros((rows, width - halo - HW), jnp.float32)

        def conv3x3(w_flat, s, t, cp):
            # Activation is already resident in buf_ref[:cp, halo:halo+HW];
            # rows outside the image (y +/- 1) read the zero halo, columns
            # outside the image (x +/- 1) are masked via the column index.
            pieces = []
            for dy in (-1, 0, 1):
                for dx in (-1, 0, 1):
                    d = dy * W + dx
                    sh = buf_ref[0:cp, halo + d:halo + d + HW]
                    if dx == -1:
                        sh = jnp.where(col != 0, sh, 0.0)
                    elif dx == 1:
                        sh = jnp.where(col != W - 1, sh, 0.0)
                    pieces.append(sh)
            patches = jnp.concatenate(pieces, axis=0)       # (9*cp, HW)
            acc = jnp.dot(w_flat.astype(compute_dtype),
                          patches.astype(compute_dtype),
                          preferred_element_type=jnp.float32)
            z = acc * s + t                                 # conv bias + BN folded
            return jnp.where(z >= 0, z, LEAKY_SLOPE * z)    # LeakyReLU(0.2)

        # Fused channel concat: x = cat([x2, x1_up], dim=1)
        buf_ref[0:C2, halo:halo + HW] = x2_ref[0]
        buf_ref[C2:C2 + C1, halo:halo + HW] = x1_ref[0]
        if Cin_p > Cin:  # zero the channel-padding rows (their weights are zero)
            buf_ref[Cin:Cin_p, halo:halo + HW] = jnp.zeros((Cin_p - Cin, HW),
                                                           jnp.float32)

        z1 = conv3x3(w1_ref[...], s1_ref[...], t1_ref[...], Cin_p)   # (Cmid_p, HW)

        buf_ref[0:Cmid_p, halo:halo + HW] = z1
        z2 = conv3x3(w2_ref[...], s2_ref[...], t2_ref[...], Cmid_p)  # (Cout, HW)

        out_ref[0] = z2.astype(out_ref.dtype)

    return kernel


# --------------------------------------------------------------------------
# Bilinear x2 upsample matrices (align_corners=True) with F.pad folded in
# --------------------------------------------------------------------------
def _bilinear_matrix(n_in, n_out):
    if n_in == 1:
        return jnp.ones((n_out, 1), jnp.float32)
    src = jnp.arange(n_out, dtype=jnp.float32) * (n_in - 1) / (n_out - 1)
    lo = jnp.clip(jnp.floor(src).astype(jnp.int32), 0, n_in - 2)
    frac = src - lo.astype(jnp.float32)
    rows = jnp.arange(n_out)
    M = jnp.zeros((n_out, n_in), jnp.float32)
    M = M.at[rows, lo].add(1.0 - frac)
    M = M.at[rows, lo + 1].add(frac)
    return M


def _up_interp_matrix(n_in, pad_lo, pad_hi):
    M = _bilinear_matrix(n_in, 2 * n_in)            # (2*n_in, n_in)
    return jnp.pad(M, ((pad_lo, pad_hi), (0, 0)))   # zero rows implement F.pad


# --------------------------------------------------------------------------
# Wrapper: UP.forward(x1, x2)   (NCHW in / NCHW out, like the PyTorch module)
# --------------------------------------------------------------------------
def up_forward(x1_nchw, x2_nchw, params, compute_dtype=jnp.float32):
    w1, b1, bn1, w2, b2, bn2 = params
    N, C1, h1, w1sp = x1_nchw.shape
    N2, C2, H, W = x2_nchw.shape
    assert N == N2
    Cin = C1 + C2
    Cmid, Cout = w1.shape[0], w2.shape[0]
    assert w1.shape[1] == Cin and w2.shape[1] == Cmid
    HW = H * W

    # ---- bilinear x2 upsample + F.pad, folded into two interpolation matrices
    diffY, diffX = H - 2 * h1, W - 2 * w1sp
    Mh = _up_interp_matrix(h1, diffY // 2, diffY - diffY // 2)     # (H, h1)
    Mw = _up_interp_matrix(w1sp, diffX // 2, diffX - diffX // 2)   # (W, w1sp)
    x1u = jnp.einsum('oh,nchw->ncow', Mh, x1_nchw)
    x1u = jnp.einsum('pw,ncow->ncop', Mw, x1u)                     # (N, C1, H, W)

    # ---- flatten spatial onto the lane axis (still NCHW; no transposes)
    x2f = x2_nchw.reshape(N, C2, HW)
    x1f = x1u.reshape(N, C1, HW)

    # ---- fold conv bias + BatchNorm(eval) into per-channel scale / shift
    g1, be1, m1, v1 = bn1
    s1 = g1 / jnp.sqrt(v1 + BN_EPS)
    t1 = (b1 - m1) * s1 + be1
    g2, be2, m2, v2 = bn2
    s2 = g2 / jnp.sqrt(v2 + BN_EPS)
    t2 = (b2 - m2) * s2 + be2

    # ---- pad channel counts to sublane multiples and flatten weights (im2col)
    Cin_p, Cmid_p = _round_up(Cin, 8), _round_up(Cmid, 8)
    w1f = jnp.transpose(w1, (0, 2, 3, 1))                          # (Cmid,3,3,Cin)
    w1f = jnp.pad(w1f, ((0, Cmid_p - Cmid), (0, 0), (0, 0), (0, Cin_p - Cin)))
    w1f = w1f.reshape(Cmid_p, 9 * Cin_p)
    w2f = jnp.transpose(w2, (0, 2, 3, 1))                          # (Cout,3,3,Cmid)
    w2f = jnp.pad(w2f, ((0, 0), (0, 0), (0, 0), (0, Cmid_p - Cmid)))
    w2f = w2f.reshape(Cout, 9 * Cmid_p)
    s1p = jnp.pad(s1, (0, Cmid_p - Cmid)).reshape(Cmid_p, 1)
    t1p = jnp.pad(t1, (0, Cmid_p - Cmid)).reshape(Cmid_p, 1)
    s2p = s2.reshape(Cout, 1)
    t2p = t2.reshape(Cout, 1)

    col_ids = (jnp.arange(HW, dtype=jnp.int32) % W).reshape(1, HW)

    halo = _round_up(W + 1, 128)         # lane-aligned zero halo on each side
    rows_buf = max(Cin_p, Cmid_p)

    kernel = _make_up_doubleconv_kernel(H, W, C2, C1, Cin, Cin_p, Cmid_p, Cout,
                                        halo, compute_dtype)

    out = pl.pallas_call(
        kernel,
        out_shape=jax.ShapeDtypeStruct((N, Cout, HW), jnp.float32),
        grid_spec=pltpu.PrefetchScalarGridSpec(
            num_scalar_prefetch=0,
            grid=(N,),
            in_specs=[
                pl.BlockSpec((1, HW), lambda n: (0, 0)),              # col ids
                pl.BlockSpec((1, C2, HW), lambda n: (n, 0, 0)),       # x2 (skip)
                pl.BlockSpec((1, C1, HW), lambda n: (n, 0, 0)),       # upsampled x1
                pl.BlockSpec((Cmid_p, 9 * Cin_p), lambda n: (0, 0)),  # w1 (im2col)
                pl.BlockSpec((Cmid_p, 1), lambda n: (0, 0)),          # scale1
                pl.BlockSpec((Cmid_p, 1), lambda n: (0, 0)),          # shift1
                pl.BlockSpec((Cout, 9 * Cmid_p), lambda n: (0, 0)),   # w2 (im2col)
                pl.BlockSpec((Cout, 1), lambda n: (0, 0)),            # scale2
                pl.BlockSpec((Cout, 1), lambda n: (0, 0)),            # shift2
            ],
            out_specs=pl.BlockSpec((1, Cout, HW), lambda n: (n, 0, 0)),
            scratch_shapes=[pltpu.VMEM((rows_buf, 2 * halo + HW), jnp.float32)],
        ),
        compiler_params=pltpu.CompilerParams(dimension_semantics=("parallel",)),
    )(col_ids, x2f, x1f, w1f, s1p, t1p, w2f, s2p, t2p)

    return out.reshape(N, Cout, H, W)


# --------------------------------------------------------------------------
# Pure-JAX reference (for correctness check only)
# --------------------------------------------------------------------------
def _conv_bn_lrelu_ref(x, w, b, bn):
    y = lax.conv_general_dilated(x, w, (1, 1), ((1, 1), (1, 1)),
                                 dimension_numbers=('NCHW', 'OIHW', 'NCHW'))
    y = y + b[None, :, None, None]
    g, be, m, v = bn
    y = ((y - m[None, :, None, None])
         / jnp.sqrt(v[None, :, None, None] + BN_EPS)
         * g[None, :, None, None] + be[None, :, None, None])
    return jnp.where(y >= 0, y, LEAKY_SLOPE * y)


def up_forward_ref(x1_nchw, x2_nchw, params):
    w1, b1, bn1, w2, b2, bn2 = params
    _, _, h1, w1sp = x1_nchw.shape
    _, _, H, W = x2_nchw.shape
    diffY, diffX = H - 2 * h1, W - 2 * w1sp
    Mh = _up_interp_matrix(h1, diffY // 2, diffY - diffY // 2)
    Mw = _up_interp_matrix(w1sp, diffX // 2, diffX - diffX // 2)
    x1u = jnp.einsum('oh,nchw->ncow', Mh, x1_nchw)
    x1u = jnp.einsum('pw,ncow->ncop', Mw, x1u)
    x = jnp.concatenate([x2_nchw, x1u], axis=1)          # torch.cat([x2, x1], 1)
    y = _conv_bn_lrelu_ref(x, w1, b1, bn1)
    y = _conv_bn_lrelu_ref(y, w2, b2, bn2)
    return y


# --------------------------------------------------------------------------
if __name__ == "__main__":
    # UP(in_channels=8, out_channels=4, bilinear=True)
    #   -> DoubleConv(8, 4, mid_channels=4)
    # x1: low-res feature map (N, 4, 8, 8), x2: skip connection (N, 4, 16, 16)
    N, C_half, H, W = 2, 4, 16, 16
    in_channels, out_channels = 2 * C_half, 4
    mid_channels = in_channels // 2

    key = jax.random.PRNGKey(0)
    ks = jax.random.split(key, 12)

    x1 = jax.random.normal(ks[0], (N, C_half, H // 2, W // 2), jnp.float32)
    x2 = jax.random.normal(ks[1], (N, C_half, H, W), jnp.float32)

    w1 = 0.1 * jax.random.normal(ks[2], (mid_channels, in_channels, 3, 3), jnp.float32)
    b1 = 0.05 * jax.random.normal(ks[3], (mid_channels,), jnp.float32)
    bn1 = (1.0 + 0.1 * jax.random.normal(ks[4], (mid_channels,), jnp.float32),    # gamma
           0.05 * jax.random.normal(ks[5], (mid_channels,), jnp.float32),         # beta
           0.1 * jax.random.normal(ks[6], (mid_channels,), jnp.float32),          # running_mean
           0.5 + jnp.abs(jax.random.normal(ks[7], (mid_channels,), jnp.float32)))  # running_var

    w2 = 0.1 * jax.random.normal(ks[8], (out_channels, mid_channels, 3, 3), jnp.float32)
    b2 = 0.05 * jax.random.normal(ks[9], (out_channels,), jnp.float32)
    bn2 = (1.0 + 0.1 * jax.random.normal(ks[10], (out_channels,), jnp.float32),
           0.05 * jax.random.normal(ks[11], (out_channels,), jnp.float32),
           jnp.zeros((out_channels,), jnp.float32),
           jnp.ones((out_channels,), jnp.float32))

    params = (w1, b1, bn1, w2, b2, bn2)

    out = jax.block_until_ready(up_forward(x1, x2, params))
    ref = jax.block_until_ready(up_forward_ref(x1, x2, params))

    assert out.shape == (N, out_channels, H, W), out.shape
    max_err = float(jnp.max(jnp.abs(out - ref)))
    assert max_err < 1e-3, max_err

    print("KERNEL_OK")
</pallas_src>

<mosaic_0001>
module attributes {stable_mosaic.version = 11 : i64} {
  func.func @kernel(%arg0: i32, %arg1: memref<1x256xi32, #tpu.memory_space<vmem>>, %arg2: memref<1x4x256xf32, #tpu.memory_space<vmem>>, %arg3: memref<1x4x256xf32, #tpu.memory_space<vmem>>, %arg4: memref<8x72xf32, #tpu.memory_space<vmem>>, %arg5: memref<8x1xf32, #tpu.memory_space<vmem>>, %arg6: memref<8x1xf32, #tpu.memory_space<vmem>>, %arg7: memref<4x72xf32, #tpu.memory_space<vmem>>, %arg8: memref<4x1xf32, #tpu.memory_space<vmem>>, %arg9: memref<4x1xf32, #tpu.memory_space<vmem>>, %arg10: memref<1x4x256xf32, #tpu.memory_space<vmem>>, %arg11: memref<8x512xf32, #tpu.memory_space<vmem>>) attributes {dimension_semantics = [#tpu.dimension_semantics<parallel>], iteration_bounds = array<i64: 2>, scalar_prefetch = 0 : i64, scratch_operands = 1 : i64, tpu.core_type = #tpu.core_type<tc>, window_params = [{pipeline_mode = #tpu.pipeline_mode<synchronous>, transform_indices = @transform_0, window_bounds = array<i64: 1, 256>}, {transform_indices = @transform_1, window_bounds = array<i64: 1, 4, 256>}, {transform_indices = @transform_2, window_bounds = array<i64: 1, 4, 256>}, {pipeline_mode = #tpu.pipeline_mode<synchronous>, transform_indices = @transform_3, window_bounds = array<i64: 8, 72>}, {pipeline_mode = #tpu.pipeline_mode<synchronous>, transform_indices = @transform_4, window_bounds = array<i64: 8, 1>}, {pipeline_mode = #tpu.pipeline_mode<synchronous>, transform_indices = @transform_5, window_bounds = array<i64: 8, 1>}, {pipeline_mode = #tpu.pipeline_mode<synchronous>, transform_indices = @transform_6, window_bounds = array<i64: 4, 72>}, {pipeline_mode = #tpu.pipeline_mode<synchronous>, transform_indices = @transform_7, window_bounds = array<i64: 4, 1>}, {pipeline_mode = #tpu.pipeline_mode<synchronous>, transform_indices = @transform_8, window_bounds = array<i64: 4, 1>}, {transform_indices = @transform_9, window_bounds = array<i64: 1, 4, 256>}]} {
    %c0 = arith.constant 0 : index
    %c0_0 = arith.constant 0 : index
    %0 = vector.load %arg1[%c0, %c0_0] : memref<1x256xi32, #tpu.memory_space<vmem>>, vector<1x256xi32>
    %cst = arith.constant 0.000000e+00 : f32
    %1 = vector.broadcast %cst : f32 to vector<8x128xf32>
    %c0_1 = arith.constant 0 : index
    %c0_2 = arith.constant 0 : index
    %2 = vector.load %arg11[%c0_1, %c0_2] : memref<8x512xf32, #tpu.memory_space<vmem>>, vector<8x128xf32>
    tpu.vector_store %arg11[%c0_1, %c0_2], %1 {strides = array<i32>} : memref<8x512xf32, #tpu.memory_space<vmem>>, vector<8x128xf32>,
    %cst_3 = arith.constant 0.000000e+00 : f32
    %3 = vector.broadcast %cst_3 : f32 to vector<8x128xf32>
    %c0_4 = arith.constant 0 : index
    %c384 = arith.constant 384 : index
    %4 = vector.load %arg11[%c0_4, %c384] : memref<8x512xf32, #tpu.memory_space<vmem>>, vector<8x128xf32>
    tpu.vector_store %arg11[%c0_4, %c384], %3 {strides = array<i32>} : memref<8x512xf32, #tpu.memory_space<vmem>>, vector<8x128xf32>,
    %c0_5 = arith.constant 0 : index
    %c0_6 = arith.constant 0 : index
    %c0_7 = arith.constant 0 : index
    %5 = vector.load %arg2[%c0_5, %c0_6, %c0_7] : memref<1x4x256xf32, #tpu.memory_space<vmem>>, vector<1x4x256xf32>
    %6 = vector.shape_cast %5 : vector<1x4x256xf32> to vector<4x256xf32>
    %c0_8 = arith.constant 0 : index
    %c128 = arith.constant 128 : index
    %7 = vector.load %arg11[%c0_8, %c128] : memref<8x512xf32, #tpu.memory_space<vmem>>, vector<4x256xf32>
    tpu.vector_store %arg11[%c0_8, %c128], %6 {strides = array<i32>} : memref<8x512xf32, #tpu.memory_space<vmem>>, vector<4x256xf32>,
    %c0_9 = arith.constant 0 : index
    %c0_10 = arith.constant 0 : index
    %c0_11 = arith.constant 0 : index
    %8 = vector.load %arg3[%c0_9, %c0_10, %c0_11] : memref<1x4x256xf32, #tpu.memory_space<vmem>>, vector<1x4x256xf32>
    %9 = vector.shape_cast %8 : vector<1x4x256xf32> to vector<4x256xf32>
    %c4 = arith.constant 4 : index
    %c128_12 = arith.constant 128 : index
    %10 = vector.load %arg11[%c4, %c128_12] : memref<8x512xf32, #tpu.memory_space<vmem>>, vector<4x256xf32>
    tpu.vector_store %arg11[%c4, %c128_12], %9 {strides = array<i32>} : memref<8x512xf32, #tpu.memory_space<vmem>>, vector<4x256xf32>,
    %c0_13 = arith.constant 0 : index
    %c0_14 = arith.constant 0 : index
    %11 = vector.load %arg4[%c0_13, %c0_14] : memref<8x72xf32, #tpu.memory_space<vmem>>, vector<8x72xf32>
    %c0_15 = arith.constant 0 : index
    %c0_16 = arith.constant 0 : index
    %12 = vector.load %arg5[%c0_15, %c0_16] : memref<8x1xf32, #tpu.memory_space<vmem>>, vector<8x1xf32>
    %c0_17 = arith.constant 0 : index
    %c0_18 = arith.constant 0 : index
    %13 = vector.load %arg6[%c0_17, %c0_18] : memref<8x1xf32, #tpu.memory_space<vmem>>, vector<8x1xf32>
    %c0_19 = arith.constant 0 : index
    %c111 = arith.constant 111 : index
    %14 = vector.load %arg11[%c0_19, %c111] : memref<8x512xf32, #tpu.memory_space<vmem>>, vector<8x256xf32>
    %c0_i32 = arith.constant 0 : i32
    %15 = vector.broadcast %c0_i32 : i32 to vector<1x256xi32>
    %16 = arith.cmpi ne, %0, %15 : vector<1x256xi32>
    %cst_20 = arith.constant 0.000000e+00 : f32
    %17 = vector.shape_cast %16 : vector<1x256xi1> to vector<1x256xi1>
    %18 = vector.broadcast %17 : vector<1x256xi1> to vector<8x256xi1>
    %19 = vector.broadcast %cst_20 : f32 to vector<8x256xf32>
    %20 = arith.select %18, %14, %19 : vector<8x256xi1>, vector<8x256xf32>
    %c0_21 = arith.constant 0 : index
    %c112 = arith.constant 112 : index
    %21 = vector.load %arg11[%c0_21, %c112] : memref<8x512xf32, #tpu.memory_space<vmem>>, vector<8x256xf32>
    %c0_22 = arith.constant 0 : index
    %c113 = arith.constant 113 : index
    %22 = vector.load %arg11[%c0_22, %c113] : memref<8x512xf32, #tpu.memory_space<vmem>>, vector<8x256xf32>
    %c15_i32 = arith.constant 15 : i32
    %23 = vector.broadcast %c15_i32 : i32 to vector<1x256xi32>
    %24 = arith.cmpi ne, %0, %23 : vector<1x256xi32>
    %cst_23 = arith.constant 0.000000e+00 : f32
    %25 = vector.shape_cast %24 : vector<1x256xi1> to vector<1x256xi1>
    %26 = vector.broadcast %25 : vector<1x256xi1> to vector<8x256xi1>
    %27 = vector.broadcast %cst_23 : f32 to vector<8x256xf32>
    %28 = arith.select %26, %22, %27 : vector<8x256xi1>, vector<8x256xf32>
    %c0_24 = arith.constant 0 : index
    %c127 = arith.constant 127 : index
    %29 = vector.load %arg11[%c0_24, %c127] : memref<8x512xf32, #tpu.memory_space<vmem>>, vector<8x256xf32>
    %c0_i32_25 = arith.constant 0 : i32
    %30 = vector.broadcast %c0_i32_25 : i32 to vector<1x256xi32>
    %31 = arith.cmpi ne, %0, %30 : vector<1x256xi32>
    %cst_26 = arith.constant 0.000000e+00 : f32
    %32 = vector.shape_cast %31 : vector<1x256xi1> to vector<1x256xi1>
    %33 = vector.broadcast %32 : vector<1x256xi1> to vector<8x256xi1>
    %34 = vector.broadcast %cst_26 : f32 to vector<8x256xf32>
    %35 = arith.select %33, %29, %34 : vector<8x256xi1>, vector<8x256xf32>
    %c0_27 = arith.constant 0 : index
    %c128_28 = arith.constant 128 : index
    %36 = vector.load %arg11[%c0_27, %c128_28] : memref<8x512xf32, #tpu.memory_space<vmem>>, vector<8x256xf32>
    %c0_29 = arith.constant 0 : index
    %c129 = arith.constant 129 : index
    %37 = vector.load %arg11[%c0_29, %c129] : memref<8x512xf32, #tpu.memory_space<vmem>>, vector<8x256xf32>
    %c15_i32_30 = arith.constant 15 : i32
    %38 = vector.broadcast %c15_i32_30 : i32 to vector<1x256xi32>
    %39 = arith.cmpi ne, %0, %38 : vector<1x256xi32>
    %cst_31 = arith.constant 0.000000e+00 : f32
    %40 = vector.shape_cast %39 : vector<1x256xi1> to vector<1x256xi1>
    %41 = vector.broadcast %40 : vector<1x256xi1> to vector<8x256xi1>
    %42 = vector.broadcast %cst_31 : f32 to vector<8x256xf32>
    %43 = arith.select %41, %37, %42 : vector<8x256xi1>, vector<8x256xf32>
    %c0_32 = arith.constant 0 : index
    %c143 = arith.constant 143 : index
    %44 = vector.load %arg11[%c0_32, %c143] : memref<8x512xf32, #tpu.memory_space<vmem>>, vector<8x256xf32>
    %c0_i32_33 = arith.constant 0 : i32
    %45 = vector.broadcast %c0_i32_33 : i32 to vector<1x256xi32>
    %46 = arith.cmpi ne, %0, %45 : vector<1x256xi32>
    %cst_34 = arith.constant 0.000000e+00 : f32
    %47 = vector.shape_cast %46 : vector<1x256xi1> to vector<1x256xi1>
    %48 = vector.broadcast %47 : vector<1x256xi1> to vector<8x256xi1>
    %49 = vector.broadcast %cst_34 : f32 to vector<8x256xf32>
    %50 = arith.select %48, %44, %49 : vector<8x256xi1>, vector<8x256xf32>
    %c0_35 = arith.constant 0 : index
    %c144 = arith.constant 144 : index
    %51 = vector.load %arg11[%c0_35, %c144] : memref<8x512xf32, #tpu.memory_space<vmem>>, vector<8x256xf32>
    %c0_36 = arith.constant 0 : index
    %c145 = arith.constant 145 : index
    %52 = vector.load %arg11[%c0_36, %c145] : memref<8x512xf32, #tpu.memory_space<vmem>>, vector<8x256xf32>
    %c15_i32_37 = arith.constant 15 : i32
    %53 = vector.broadcast %c15_i32_37 : i32 to vector<1x256xi32>
    %54 = arith.cmpi ne, %0, %53 : vector<1x256xi32>
    %cst_38 = arith.constant 0.000000e+00 : f32
    %55 = vector.shape_cast %54 : vector<1x256xi1> to vector<1x256xi1>
    %56 = vector.broadcast %55 : vector<1x256xi1> to vector<8x256xi1>
    %57 = vector.broadcast %cst_38 : f32 to vector<8x256xf32>
    %58 = arith.select %56, %52, %57 : vector<8x256xi1>, vector<8x256xf32>
    %59 = tpu.concatenate %20, %21, %28, %35, %36, %43, %50, %51, %58 in 0 : vector<8x256xf32>, vector<8x256xf32>, vector<8x256xf32>, vector<8x256xf32>, vector<8x256xf32>, vector<8x256xf32>, vector<8x256xf32>, vector<8x256xf32>, vector<8x256xf32> -> vector<72x256xf32>
    %cst_39 = arith.constant dense<0.000000e+00> : vector<8x256xf32>
    %60 = tpu.matmul %11, %59, %cst_39 {dimension_numbers = #tpu.dot_dimension_numbers<[1], [0], [0], [1], [0, 0, 1, 1], [], []>} : vector<8x72xf32>, vector<72x256xf32>, vector<8x256xf32> -> vector<8x256xf32>
    %61 = vector.broadcast %12 : vector<8x1xf32> to vector<8x256xf32>
    %62 = arith.mulf %60, %61 : vector<8x256xf32>
    %63 = vector.broadcast %13 : vector<8x1xf32> to vector<8x256xf32>
    %64 = arith.addf %62, %63 : vector<8x256xf32>
    %cst_40 = arith.constant 0.000000e+00 : f32
    %65 = vector.broadcast %cst_40 : f32 to vector<8x256xf32>
    %66 = arith.cmpf oge, %64, %65 : vector<8x256xf32>
    %cst_41 = arith.constant 2.000000e-01 : f32
    %67 = vector.broadcast %cst_41 : f32 to vector<8x256xf32>
    %68 = arith.mulf %67, %64 : vector<8x256xf32>
    %69 = arith.select %66, %64, %68 : vector<8x256xi1>, vector<8x256xf32>
    %c0_42 = arith.constant 0 : index
    %c128_43 = arith.constant 128 : index
    %70 = vector.load %arg11[%c0_42, %c128_43] : memref<8x512xf32, #tpu.memory_space<vmem>>, vector<8x256xf32>
    tpu.vector_store %arg11[%c0_42, %c128_43], %69 {strides = array<i32>} : memref<8x512xf32, #tpu.memory_space<vmem>>, vector<8x256xf32>,
    %c0_44 = arith.constant 0 : index
    %c0_45 = arith.constant 0 : index
    %71 = vector.load %arg7[%c0_44, %c0_45] : memref<4x72xf32, #tpu.memory_space<vmem>>, vector<4x72xf32>
    %c0_46 = arith.constant 0 : index
    %c0_47 = arith.constant 0 : index
    %72 = vector.load %arg8[%c0_46, %c0_47] : memref<4x1xf32, #tpu.memory_space<vmem>>, vector<4x1xf32>
    %c0_48 = arith.constant 0 : index
    %c0_49 = arith.constant 0 : index
    %73 = vector.load %arg9[%c0_48, %c0_49] : memref<4x1xf32, #tpu.memory_space<vmem>>, vector<4x1xf32>
    %c0_50 = arith.constant 0 : index
    %c111_51 = arith.constant 111 : index
    %74 = vector.load %arg11[%c0_50, %c111_51] : memref<8x512xf32, #tpu.memory_space<vmem>>, vector<8x256xf32>
    %c0_i32_52 = arith.constant 0 : i32
    %75 = vector.broadcast %c0_i32_52 : i32 to vector<1x256xi32>
    %76 = arith.cmpi ne, %0, %75 : vector<1x256xi32>
    %cst_53 = arith.constant 0.000000e+00 : f32
    %77 = vector.shape_cast %76 : vector<1x256xi1> to vector<1x256xi1>
    %78 = vector.broadcast %77 : vector<1x256xi1> to vector<8x256xi1>
    %79 = vector.broadcast %cst_53 : f32 to vector<8x256xf32>
    %80 = arith.select %78, %74, %79 : vector<8x256xi1>, vector<8x256xf32>
    %c0_54 = arith.constant 0 : index
    %c112_55 = arith.constant 112 : index
    %81 = vector.load %arg11[%c0_54, %c112_55] : memref<8x512xf32, #tpu.memory_space<vmem>>, vector<8x256xf32>
    %c0_56 = arith.constant 0 : index
    %c113_57 = arith.constant 113 : index
    %82 = vector.load %arg11[%c0_56, %c113_57] : memref<8x512xf32, #tpu.memory_space<vmem>>, vector<8x256xf32>
    %c15_i32_58 = arith.constant 15 : i32
    %83 = vector.broadcast %c15_i32_58 : i32 to vector<1x256xi32>
    %84 = arith.cmpi ne, %0, %83 : vector<1x256xi32>
    %cst_59 = arith.constant 0.000000e+00 : f32
    %85 = vector.shape_cast %84 : vector<1x256xi1> to vector<1x256xi1>
    %86 = vector.broadcast %85 : vector<1x256xi1> to vector<8x256xi1>
    %87 = vector.broadcast %cst_59 : f32 to vector<8x256xf32>
    %88 = arith.select %86, %82, %87 : vector<8x256xi1>, vector<8x256xf32>
    %c0_60 = arith.constant 0 : index
    %c127_61 = arith.constant 127 : index
    %89 = vector.load %arg11[%c0_60, %c127_61] : memref<8x512xf32, #tpu.memory_space<vmem>>, vector<8x256xf32>
    %c0_i32_62 = arith.constant 0 : i32
    %90 = vector.broadcast %c0_i32_62 : i32 to vector<1x256xi32>
    %91 = arith.cmpi ne, %0, %90 : vector<1x256xi32>
    %cst_63 = arith.constant 0.000000e+00 : f32
    %92 = vector.shape_cast %91 : vector<1x256xi1> to vector<1x256xi1>
    %93 = vector.broadcast %92 : vector<1x256xi1> to vector<8x256xi1>
    %94 = vector.broadcast %cst_63 : f32 to vector<8x256xf32>
    %95 = arith.select %93, %89, %94 : vector<8x256xi1>, vector<8x256xf32>
    %c0_64 = arith.constant 0 : index
    %c128_65 = arith.constant 128 : index
    %96 = vector.load %arg11[%c0_64, %c128_65] : memref<8x512xf32, #tpu.memory_space<vmem>>, vector<8x256xf32>
    %c0_66 = arith.constant 0 : index
    %c129_67 = arith.constant 129 : index
    %97 = vector.load %arg11[%c0_66, %c129_67] : memref<8x512xf32, #tpu.memory_space<vmem>>, vector<8x256xf32>
    %c15_i32_68 = arith.constant 15 : i32
    %98 = vector.broadcast %c15_i32_68 : i32 to vector<1x256xi32>
    %99 = arith.cmpi ne, %0, %98 : vector<1x256xi32>
    %cst_69 = arith.constant 0.000000e+00 : f32
    %100 = vector.shape_cast %99 : vector<1x256xi1> to vector<1x256xi1>
    %101 = vector.broadcast %100 : vector<1x256xi1> to vector<8x256xi1>
    %102 = vector.broadcast %cst_69 : f32 to vector<8x256xf32>
    %103 = arith.select %101, %97, %102 : vector<8x256xi1>, vector<8x256xf32>
    %c0_70 = arith.constant 0 : index
    %c143_71 = arith.constant 143 : index
    %104 = vector.load %arg11[%c0_70, %c143_71] : memref<8x512xf32, #tpu.memory_space<vmem>>, vector<8x256xf32>
    %c0_i32_72 = arith.constant 0 : i32
    %105 = vector.broadcast %c0_i32_72 : i32 to vector<1x256xi32>
    %106 = arith.cmpi ne, %0, %105 : vector<1x256xi32>
    %cst_73 = arith.constant 0.000000e+00 : f32
    %107 = vector.shape_cast %106 : vector<1x256xi1> to vector<1x256xi1>
    %108 = vector.broadcast %107 : vector<1x256xi1> to vector<8x256xi1>
    %109 = vector.broadcast %cst_73 : f32 to vector<8x256xf32>
    %110 = arith.select %108, %104, %109 : vector<8x256xi1>, vector<8x256xf32>
    %c0_74 = arith.constant 0 : index
    %c144_75 = arith.constant 144 : index
    %111 = vector.load %arg11[%c0_74, %c144_75] : memref<8x512xf32, #tpu.memory_space<vmem>>, vector<8x256xf32>
    %c0_76 = arith.constant 0 : index
    %c145_77 = arith.constant 145 : index
    %112 = vector.load %arg11[%c0_76, %c145_77] : memref<8x512xf32, #tpu.memory_space<vmem>>, vector<8x256xf32>
    %c15_i32_78 = arith.constant 15 : i32
    %113 = vector.broadcast %c15_i32_78 : i32 to vector<1x256xi32>
    %114 = arith.cmpi ne, %0, %113 : vector<1x256xi32>
    %cst_79 = arith.constant 0.000000e+00 : f32
    %115 = vector.shape_cast %114 : vector<1x256xi1> to vector<1x256xi1>
    %116 = vector.broadcast %115 : vector<1x256xi1> to vector<8x256xi1>
    %117 = vector.broadcast %cst_79 : f32 to vector<8x256xf32>
    %118 = arith.select %116, %112, %117 : vector<8x256xi1>, vector<8x256xf32>
    %119 = tpu.concatenate %80, %81, %88, %95, %96, %103, %110, %111, %118 in 0 : vector<8x256xf32>, vector<8x256xf32>, vector<8x256xf32>, vector<8x256xf32>, vector<8x256xf32>, vector<8x256xf32>, vector<8x256xf32>, vector<8x256xf32>, vector<8x256xf32> -> vector<72x256xf32>
    %cst_80 = arith.constant dense<0.000000e+00> : vector<4x256xf32>
    %120 = tpu.matmul %71, %119, %cst_80 {dimension_numbers = #tpu.dot_dimension_numbers<[1], [0], [0], [1], [0, 0, 1, 1], [], []>} : vector<4x72xf32>, vector<72x256xf32>, vector<4x256xf32> -> vector<4x256xf32>
    %121 = vector.broadcast %72 : vector<4x1xf32> to vector<4x256xf32>
    %122 = arith.mulf %120, %121 : vector<4x256xf32>
    %123 = vector.broadcast %73 : vector<4x1xf32> to vector<4x256xf32>
    %124 = arith.addf %122, %123 : vector<4x256xf32>
    %cst_81 = arith.constant 0.000000e+00 : f32
    %125 = vector.broadcast %cst_81 : f32 to vector<4x256xf32>
    %126 = arith.cmpf oge, %124, %125 : vector<4x256xf32>
    %cst_82 = arith.constant 2.000000e-01 : f32
    %127 = vector.broadcast %cst_82 : f32 to vector<4x256xf32>
    %128 = arith.mulf %127, %124 : vector<4x256xf32>
    %129 = arith.select %126, %124, %128 : vector<4x256xi1>, vector<4x256xf32>
    %c0_83 = arith.constant 0 : index
    %c0_84 = arith.constant 0 : index
    %c0_85 = arith.constant 0 : index
    %130 = vector.load %arg10[%c0_83, %c0_84, %c0_85] : memref<1x4x256xf32, #tpu.memory_space<vmem>>, vector<1x4x256xf32>
    %131 = vector.shape_cast %130 : vector<1x4x256xf32> to vector<4x256xf32>
    %132 = vector.shape_cast %129 : vector<4x256xf32> to vector<1x4x256xf32>
    tpu.vector_store %arg10[%c0_83, %c0_84, %c0_85], %132 {strides = array<i32>} : memref<1x4x256xf32, #tpu.memory_space<vmem>>, vector<1x4x256xf32>,
    return
  }
  func.func @transform_0(%arg0: i32) -> (i32, i32) {
    %c0_i32 = arith.constant 0 : i32
    %c0_i32_0 = arith.constant 0 : i32
    %c0_i32_1 = arith.constant 0 : i32
    return %c0_i32, %c0_i32_0 : i32, i32
  }
  func.func @transform_1(%arg0: i32) -> (i32, i32, i32) {
    %c0_i32 = arith.constant 0 : i32
    %c0_i32_0 = arith.constant 0 : i32
    %c0_i32_1 = arith.constant 0 : i32
    return %arg0, %c0_i32, %c0_i32_0 : i32, i32, i32
  }
  func.func @transform_2(%arg0: i32) -> (i32, i32, i32) {
    %c0_i32 = arith.constant 0 : i32
    %c0_i32_0 = arith.constant 0 : i32
    %c0_i32_1 = arith.constant 0 : i32
    return %arg0, %c0_i32, %c0_i32_0 : i32, i32, i32
  }
  func.func @transform_3(%arg0: i32) -> (i32, i32) {
    %c0_i32 = arith.constant 0 : i32
    %c0_i32_0 = arith.constant 0 : i32
    %c0_i32_1 = arith.constant 0 : i32
    return %c0_i32, %c0_i32_0 : i32, i32
  }
  func.func @transform_4(%arg0: i32) -> (i32, i32) {
    %c0_i32 = arith.constant 0 : i32
    %c0_i32_0 = arith.constant 0 : i32
    %c0_i32_1 = arith.constant 0 : i32
    return %c0_i32, %c0_i32_0 : i32, i32
  }
  func.func @transform_5(%arg0: i32) -> (i32, i32) {
    %c0_i32 = arith.constant 0 : i32
    %c0_i32_0 = arith.constant 0 : i32
    %c0_i32_1 = arith.constant 0 : i32
    return %c0_i32, %c0_i32_0 : i32, i32
  }
  func.func @transform_6(%arg0: i32) -> (i32, i32) {
    %c0_i32 = arith.constant 0 : i32
    %c0_i32_0 = arith.constant 0 : i32
    %c0_i32_1 = arith.constant 0 : i32
    return %c0_i32, %c0_i32_0 : i32, i32
  }
  func.func @transform_7(%arg0: i32) -> (i32, i32) {
    %c0_i32 = arith.constant 0 : i32
    %c0_i32_0 = arith.constant 0 : i32
    %c0_i32_1 = arith.constant 0 : i32
    return %c0_i32, %c0_i32_0 : i32, i32
  }
  func.func @transform_8(%arg0: i32) -> (i32, i32) {
    %c0_i32 = arith.constant 0 : i32
    %c0_i32_0 = arith.constant 0 : i32
    %c0_i32_1 = arith.constant 0 : i32
    return %c0_i32, %c0_i32_0 : i32, i32
  }
  func.func @transform_9(%arg0: i32) -> (i32, i32, i32) {
    %c0_i32 = arith.constant 0 : i32
    %c0_i32_0 = arith.constant 0 : i32
    %c0_i32_1 = arith.constant 0 : i32
    return %arg0, %c0_i32, %c0_i32_0 : i32, i32, i32
  }
}

</mosaic_0001>

<bundles_post_ra>
// kernel: tpu_custom_call.1
= control target key start
LH: loop header
LB: loop body
LE: loop exit
PB: predicated region body
PF: predicated region fallthrough
CT: control target
= control target key end

     0   :  { %s1644_s0 = inlined_call_operand.hbm [shape: s32[1,256], index: 0, kind: input, shape index: {}]   ;;  %s1645_s1 = inlined_call_operand.vmem [shape: f32[2,4,256], index: 1, kind: input, shape index: {}]   ;;  %s1646_s2 = inlined_call_operand.hbm [shape: f32[2,4,256], index: 2, kind: input, shape index: {}]   ;;  %s1647_s3 = inlined_call_operand.vmem [shape: f32[8,72], index: 3, kind: input, shape index: {}]   ;;  %s1648_s4 = inlined_call_operand.vmem [shape: f32[8,1], index: 4, kind: input, shape index: {}]   ;;  %s1649_s5 = inlined_call_operand.vmem [shape: f32[8,1], index: 5, kind: input, shape index: {}]   ;;  %s1650_s6 = inlined_call_operand.vmem [shape: f32[4,72], index: 6, kind: input, shape index: {}]   ;;  %s1651_s7 = inlined_call_operand.vmem [shape: f32[4,1], index: 7, kind: input, shape index: {}]   ;;  %s1652_s8 = inlined_call_operand.vmem [shape: f32[4,1], index: 8, kind: input, shape index: {}]   ;;  %s1653_s9 = inlined_call_operand.hbm [shape: f32[2,4,256], index: 9, kind: output, shape index: {}]  }
   0x1   :  { %1661 = sst [smem:[#allocation15_spill]] %s1644_s0 }
   0x2   :  { %14 = vsyncpa [#allocation4], 0 }
   0x3   :  { %15 = vsyncpa [#allocation7], 0 }
   0x4   :  { %17 = vsyncpa [#allocation7 + $0x1], 0 }
   0x5   :  { %18 = vsyncpa [#allocation5], 0 }
   0x6   :  { %20 = vsyncpa [#allocation5 + $0x1], 0  ;;  %s1253_s30 = smov 0   ;;  %s1255_s10 = smov 0  }
   0x7   :  { %s1257_s11 = smov 0   ;;  %s1259_s12 = smov 0  }
   0x8 LB: > { %1662 = sst [smem:[#allocation12_spill]] %s1184_s11  ;;  %s1274_s13 = sadd.s32 4294967295, %s1188_s12   ;;  %s1188_s12 = sphi %s1259_s12, %s1681_s12   ;;  %s1184_s11 = sphi %s1257_s11, %s1683_s11   ;;  %s1180_s10 = sphi %s1255_s10, %s1685_s10   ;;  %s1176_s30 = sphi %s1253_s30, %s1684_s30  }
   0x9   : > { %s948_s14 = sadd.s32 4294967294, %s1188_s12   ;;  %p93_p0 = scmp.ne.s32.totalorder %s1180_s10, %s1176_s30 }
   0xa   : > { %p1654_p1 = scmp.eq.s32.totalorder %s1274_s13, 0  ;;  %p249_p3 = scmp.eq.s32.totalorder %s948_s14, 1 }
   0xb   : > { %p949_p5 = scmp.ge.s32.totalorder %s1188_s12, 1  ;;  %p256_p7 = scmp.lt.s32.totalorder %s1188_s12, 3 }
   0xc   : > { %p1283_p4 = por %p1654_p1, %p93_p0  ;;  %p1288_p6 = por %p249_p3, %p93_p0 }
   0xd   : > { %p1293_p8 = pnand %p949_p5, %p256_p7  ;;  %s1190_s18 = smov [#allocation3]  }
   0xe   : > { %s1663_s15 = scalar_select %p1283_p4, 1, 0 }
   0xf   : > { %s1664_s16 = scalar_select %p1288_p6, 1, 0 }
  0x10   : > { %s1665_s17 = scalar_select %p1293_p8, 1, 0 }
  0x11   : > { %s269_s19 = sshll.u32 %s1190_s18, 4  ;;  %p1003_p10 = pneg %p1293_p8  ;;  %s270_s19 = int_to_ptr.vmem [resolvable:$true] %s269_s19 }
  0x12   : > { %s1301_s20 = sadd.s32 1, %s1188_s12   ;;  %s80_s24 = sadd.s32 1, %s1184_s11 }
  0x13   : > { %1666 = sst [smem:[#allocation13_spill]] %s1301_s20  ;;  %p1305_p11 = pnand %p1003_p10, %p1654_p1 }
  0x14   : > { %s77_s22 = ssub.s32 %s1188_s12, %s1301_s20  ;;  %p87_p13 = scmp.ne.s32.totalorder %s1184_s11, %s1180_s10 }
  0x15   : > { %p1311_p12 = scmp.eq.s32.totalorder %s77_s22, 0  ;;  %p1068_p0 = pneg %p1305_p11 }
  0x16   : > { %s1077_s25 = scalar_lea.vmem %s270_s19, 32  ;;  %p1085_p9 = scmp.lt.s32.totalorder %s270_s19, %s270_s19 }
  0x17   : > { %p1078_p3 = scmp.ne.s32.totalorder %s270_s19, %s1077_s25  ;;  %p1086_p2 = scmp.lt.s32.totalorder %s1077_s25, %s1077_s25 }
  0x19   : > { %p1080_p5 = pnand %p1078_p3, %p1068_p0  ;;  %p1087_p10 = por %p1086_p2, %p1085_p9 }
  0x1b   : > { %p1081_p7 = pneg %p1080_p5 }
  0x1d   : > { %p1088_p1 = pnand %p1087_p10, %p1081_p7 }
  0x1f   : > { %1091 = shalt.err (!%p1088_p1)
}
  0x20   : > { %s1669_s0 = sld [smem:[#allocation15_spill]]  ;;  %p88_p1 = scmp.eq.s32.totalorder %s1188_s12, 0 }
  0x21   : > { %s1328_s28 = scalar_select %p1311_p12, %s1184_s11, %s80_s24  }
  0x22   : > { %p1671_p2 = scmp.eq.s32.totalorder %s1274_s13, 1  ;;  %p1016_p0 = scmp.lt.s32.totalorder %s1188_s12, 2 }
  0x23   : > { %1670 = sst [smem:[#allocation14_spill]] %s1328_s28  ;;  %s306_s14 = sand.u32 1, %s1184_s11  }
  0x24   : > { %p1336_p9 = por %p1671_p2, %p87_p13  ;;  %p89_p3 = por %p88_p1, %p87_p13 }
  0x25   : > { %s952_s18 = sshll.u32 %s306_s14, 3  ;;  %s992_s21 = sshll.u32 %s1188_s12, 7 }
  0x26   : > { %1006 = dma.hbm_to_vmem [thread:$0]  (!%p1305_p11), %s1669_s0, 32, %s270_s19, [#allocation4]  }
  0x27   : > { %s1672_s29 = scalar_select %p1336_p9, 1, 0 }
  0x28   : > { %s1349_s19 = scalar_lea.hbm %s1646_s2, %s992_s21  ;;  %s310_s23 = scalar_lea.vmem [#allocation6], %s952_s18 }
  0x29   : > { %s318_s24 = sshll.u32 %s310_s23, 4  ;;  %p1351_p11 = pnand %p1016_p0, %p89_p3  ;;  %s319_s24 = int_to_ptr.vmem [resolvable:$true] %s318_s24 }
  0x2a   : > { %s307_s27 = scalar_lea.sflag [#allocation7], %s306_s14  ;;  %s1092_s0 = scalar_lea.hbm %s1349_s19, 128 }
  0x2b   : > { %p1093_p12 = scmp.ne.s32.totalorder %s1349_s19, %s1092_s0  ;;  %p1094_p13 = pneg %p1351_p11 }
  0x2c   : > { %s1097_s25 = scalar_lea.hbm %s1646_s2, 256  ;;  %p1098_p10 = scmp.lt.s32.totalorder %s1349_s19, %s1646_s2 }
  0x2d   : > { %p1095_p5 = pnand %p1094_p13, %p1093_p12  ;;  %p1099_p1 = scmp.lt.s32.totalorder %s1097_s25, %s1092_s0 }
  0x2f   : > { %p1096_p7 = pneg %p1095_p5  ;;  %p1100_p2 = por %p1099_p1, %p1098_p10 }
  0x31   : > { %p1101_p0 = pnand %p1100_p2, %p1096_p7 }
  0x33   : > { %1104 = shalt.err (!%p1101_p0)
}
  0x34   : > { %s1105_s23 = scalar_lea.vmem %s319_s24, 128  ;;  %s1191_s14 = smov [#allocation6]  }
  0x35   : > { %p1106_p3 = scmp.ne.s32.totalorder %s319_s24, %s1105_s23  ;;  %s1110_s11 = sshll.u32 %s1191_s14, 4  ;;  %s1111_s11 = int_to_ptr.vmem [resolvable:$false] %s1110_s11 }
  0x36   : > { %s1112_s20 = scalar_lea.vmem %s1111_s11, 256  ;;  %p1113_p12 = scmp.lt.s32.totalorder %s319_s24, %s1111_s11 }
  0x37   : > { %p1108_p6 = pnand %p1106_p3, %p1094_p13  ;;  %p1114_p5 = scmp.lt.s32.totalorder %s1112_s20, %s1105_s23 }
  0x39   : > { %p1109_p9 = pneg %p1108_p6  ;;  %p1115_p4 = por %p1114_p5, %p1113_p12 }
  0x3b   : > { %p1116_p8 = pnand %p1115_p4, %p1109_p9 }
  0x3d   : > { %1119 = shalt.err (!%p1116_p8)
}
  0x3e   : > { %1010 = dma.hbm_to_vmem [thread:$0]  (!%p1351_p11), %s1349_s19, 128, %s319_s24, %s307_s27  }
  0x3f   : > { %p1674_p7 = scmp.ne.s32.totalorder %s1665_s17, 0 }
  0x40   : > { %p1675_p10 = scmp.eq.s32.totalorder (!%p1674_p7), %s1274_s13, 0 }
  0x41   : > { %327 = sbr.rel (%p1674_p7) target bundleno = 815 (0x32f), region = 56 }
  0x46   : > { %1163 = dma.done.wait (%p1675_p10), [#allocation4], 32   ;;  %p1676_p6 = pmov %p1675_p10 }
  0x47   : > { %s1376_s0 = sand.u32 1, %s1180_s10   ;;  %p1677_p4 = scmp.ne.s32.totalorder %s1663_s15, 0 }
  0x48   : > { %1165 = vsyncadd (%p1676_p6), [#allocation4], 4294967264  ;;  %s957_s11 = sshll.u32 %s1376_s0, 3  ;;  %s334_s20 = scalar_lea.sflag [#allocation7], %s1376_s0 }
  0x49   : > { %s337_s28 = scalar_lea.vmem [#allocation6], %s957_s11 }
  0x4a   : > { %1167 = dma.done.wait (%p1677_p4), %s334_s20, 128  }
  0x4b   : > { %1169 = vsyncadd (%p1677_p4), %s334_s20, 4294967168  ;;  %v1192_v0 = vmov 0.0   ;;  %s1193_s17 = smov 111   ;;  %s1194_s19 = smov 113   ;;  %v1195_v1 = vmov 0   ;;  %v391_v3 = vld [vmem:[%s337_s28] sm:$0xff]  ;;  %v405_v10 = vlaneseq }
  0x4c   : > { %505 = vrot.lane.b32.xlu0 %v1192_v0, %s1193_s17  ;;  %492 = vrot.lane.b32.xlu1 %v1192_v0, %s1194_s19  ;;  %p377_p8 = scmp.lt.s32.totalorder %s1274_s13, 1  ;;  %s1196_s15 = smov 112   ;;  %v393_v4 = vcombine.low %v391_v3, %v391_v3  ;;  %396 = vst [vmem:[#allocation2 + $0x18] sm:$0xf0] %v391_v3  ;;  %v398_v8 = vld [vmem:[%s1648_s4] sm:$0xff]  ;;  %vm507_vm1 = vcmask 908288  }
  0x4d   : > { %604 = vmatprep.mubr.f32.mxu0 %v1192_v0  ;;  %1062 = vset.pattern.permute.xlu0 %v1195_v1  ;;  %s1197_s25 = smov 127   ;;  %s1198_s18 = smov 1   ;;  %v399_v9 = vld [vmem:[%s1649_s5] sm:$0xff]  ;;  %v406_v12 = vshrl.u32 %v405_v10, 7  ;;  %vm531_vm5 = vcmask 916480   ;;  %vm494_vm6 = vcmask 924672  }
  0x4e   : > { %s378_s24 = scalar_select %p377_p8, %s1274_s13, 1  ;;  %1063 = vset.pattern.permute.xlu1 %v1195_v1  ;;  %807 = vmatprep.mubr.f32.mxu1 %v1192_v0  ;;  %395 = vst [vmem:[#allocation2 + $0x10] sm:$0xf0] %v393_v4  ;;  %v382_v11 = vld [vmem:[#allocation3] sm:$0x3]  ;;  %vm481_vm9 = vcmask 1039360  }
  0x4f   : > { %s1199_s23 = smov 15   ;;  %s1200_s14 = smov 16   ;;  %vm431_vm0 = vcmp.ne.s32.totalorder %v382_v11, 15  ;;  %v411_v14 = vsub.s32 1, %v406_v12  ;;  %v407_v16 = vsub.s32 0, %v406_v12  ;;  %vm403_vm2 = vcmp.ne.s32.totalorder %v382_v11, 0 }
  0x50   : > { %529 = vrot.lane.b32.xlu0 %v1192_v0, %s1196_s15  ;;  %s993_s26 = sshll.u32 %s378_s24, 3  ;;  %s1201_s20 = smov 17   ;;  %v432_v15 = vsel %vm431_vm0, 1, %v1195_v1  ;;  %v404_v25 = vsel %vm403_vm2, 1, %v1195_v1  ;;  %vm462_vm10 = vcmask 7168   ;;  %vm449_vm11 = vcmask 121856  }
  0x51   : > { %s381_s22 = scalar_lea.vmem %s1645_s1, %s993_s26  ;;  %v1466_v19 = vrot.slane %v432_v15, %v411_v14  ;;  %v1468_v20 = vrot.slane %v432_v15, %v407_v16  ;;  %v1479_v28 = vrot.slane %v404_v25, %v411_v14  ;;  %v1482_v30 = vrot.slane %v404_v25, %v407_v16  ;;  %v397_v60 = vld [vmem:[%s1647_s3] sm:$0xff]  ;;  %s840_s21 = scalar_lea.sflag [#allocation5], %s1376_s0 }
  0x52   : > { %v385_v2 = vld [vmem:[%s381_s22] sm:$0xff]  ;;  %vm520_vm12 = vcmask 130048   ;;  %vm424_vm13 = vcmask 138240   ;;  %vm536_vm14 = vcmask 588800   ;;  %p1678_p11 = scmp.ne.s32.totalorder %s1672_s29, 0 }
  0x53   : > { %389 = vst [vmem:[#allocation2 + $0x10] sm:$0xf] %v385_v2  ;;  %v387_v5 = vcombine.high %v385_v2, %v385_v2  ;;  %vm442_vm3 = vcmp.eq.s32.totalorder %v1466_v19, 1  ;;  %vm441_vm4 = vcmp.eq.s32.totalorder %v1468_v20, 1  ;;  %vm414_vm7 = vcmp.eq.s32.totalorder %v1479_v28, 1 }
  0x54   : > { %vm413_vm8 = vcmp.eq.s32.totalorder %v1482_v30, 1  ;;  %v634_v11 = vld [vmem:[%s1651_s7] sm:$0xf] }
  0x55   : > { %390 = vst [vmem:[#allocation2 + $0x18] sm:$0xf] %v387_v5  ;;  %v635_v12 = vld [vmem:[%s1652_s8] sm:$0xf] }
  0x56   : > { %v633_v19 = vld [vmem:[%s1650_s6] sm:$0xf] }
  0x5a   : > { %v1401_v6 = vld [vmem:[#allocation2 + $0x10] sm:$0xff] }
  0x5b   : > { %501 = vrot.lane.b32.xlu1 %v1401_v6, %s1193_s17 }
  0x5c   : > { %v1403_v7 = vld [vmem:[#allocation2 + $0x18] sm:$0xff] }
  0x5d   : > { %503 = vrot.lane.b32.xlu0 %v1403_v7, %s1193_s17 }
  0x5f   : > { %527 = vrot.lane.b32.xlu1 %v1403_v7, %s1196_s15 }
  0x61   : > { %490 = vrot.lane.b32.xlu0 %v1403_v7, %s1194_s19 }
  0x63   : > { %525 = vrot.lane.b32.xlu1 %v1401_v6, %s1196_s15 }
  0x65   : > { %488 = vrot.lane.b32.xlu0 %v1401_v6, %s1194_s19 }
  0x67   : > { %477 = vrot.lane.b32.xlu1 %v1403_v7, %s1197_s25 }
  0x69   : > { %479 = vrot.lane.b32.xlu0 %v1192_v0, %s1197_s25 }
  0x6b   : > { %475 = vrot.lane.b32.xlu1 %v1401_v6, %s1197_s25 }
  0x6d   : > { %458 = vrot.lane.b32.xlu0 %v1401_v6, %s1198_s18 }
  0x6f   : > { %460 = vrot.lane.b32.xlu1 %v1403_v7, %s1198_s18 }
  0x71   : > { %456 = vrot.lane.b32.xlu0 %v1192_v0, %s1198_s18 }
  0x73   : > { %445 = vrot.lane.b32.xlu1 %v1401_v6, %s1199_s23 }
  0x75   : > { %447 = vrot.lane.b32.xlu0 %v1403_v7, %s1199_s23 }
  0x77   : > { %443 = vrot.lane.b32.xlu1 %v1192_v0, %s1199_s23 }
  0x79   : > { %516 = vrot.lane.b32.xlu0 %v1401_v6, %s1200_s14 }
  0x7b   : > { %518 = vrot.lane.b32.xlu1 %v1403_v7, %s1200_s14 }
  0x7d   : > { %514 = vrot.lane.b32.xlu0 %v1192_v0, %s1200_s14 }
  0x7f   : > { %420 = vrot.lane.b32.xlu1 %v1401_v6, %s1201_s20 }
  0x81   : > { %422 = vrot.lane.b32.xlu0 %v1403_v7, %s1201_s20 }
  0x83   : > { %418 = vrot.lane.b32.xlu1 %v1192_v0, %s1201_s20 }
  0x85   : > { %613 = vperm.xlu0 %1062, %v398_v8  }
  0x87   : > { %620 = vperm.xlu1 %1063, %v399_v9  }
  0x89   : > { %712 = vrot.lane.b32.xlu0 %v1192_v0, %s1193_s17 }
  0x8b   : > { %734 = vrot.lane.b32.xlu1 %v1192_v0, %s1196_s15 }
  0x8d   : > { %700 = vrot.lane.b32.xlu0 %v1192_v0, %s1194_s19 }
  0x8f   : > { %688 = vrot.lane.b32.xlu1 %v1192_v0, %s1197_s25 }
  0x91   : > { %654 = vrot.lane.b32.xlu0 %v1192_v0, %s1199_s23 }
  0x93   : > { %666 = vrot.lane.b32.xlu1 %v1192_v0, %s1198_s18 }
  0xbe   : > { %v506_v13 = vpop.permute.xlu0 %505  ;;  %v493_v17 = vpop.permute.xlu1 %492 }
  0xc2   : > { %v530_v18 = vpop.permute.xlu0 %529 }
  0xcd   : > { %v502_v21 = vpop.permute.xlu1 %501 }
  0xcf   : > { %v504_v22 = vpop.permute.xlu0 %503 }
  0xd0   : > { %v509_v23 = vsel %vm507_vm1, %v504_v22, %v506_v13  ;;  %v508_v24 = vsel %vm507_vm1, %v502_v21, %v504_v22 }
  0xd1   : > { %961 = vmatprep.subr.msk.mxu0 %vm442_vm3, %v509_v23  ;;  %v528_v26 = vpop.permute.xlu1 %527 }
  0xd2   : > { %962 = vmatpush1.msk.msra.mxu0 %vm441_vm4, %v508_v24  ;;  %v533_v29 = vsel %vm531_vm5, %v528_v26, %v530_v18 }
  0xd3   : > { %v491_v27 = vpop.permute.xlu0 %490  ;;  %556 = vmatprep.subr.mxu0 %v533_v29 }
  0xd4   : > { %v496_v34 = vsel %vm494_vm6, %v491_v27, %v493_v17 }
  0xd5   : > { %v526_v31 = vpop.permute.xlu1 %525 }
  0xd6   : > { %v532_v33 = vsel %vm531_vm5, %v526_v31, %v528_v26 }
  0xd7   : > { %v489_v32 = vpop.permute.xlu0 %488  ;;  %557 = vmatpush1.msra.mxu0 %v532_v33 }
  0xd8   : > { %v495_v35 = vsel %vm494_vm6, %v489_v32, %v491_v27  ;;  %963 = vmatprep.subr.msk.mxu0 %vm414_vm7, %v496_v34 }
  0xd9   : > { %v478_v36 = vpop.permute.xlu1 %477  ;;  %964 = vmatpush1.msk.msra.mxu0 %vm413_vm8, %v495_v35 }
  0xdb   : > { %v480_v37 = vpop.permute.xlu0 %479 }
  0xdc   : > { %v483_v38 = vsel %vm481_vm9, %v478_v36, %v480_v37 }
  0xdd   : > { %965 = vmatprep.subr.msk.mxu0 %vm442_vm3, %v483_v38  ;;  %v476_v39 = vpop.permute.xlu1 %475 }
  0xde   : > { %v482_v41 = vsel %vm481_vm9, %v476_v39, %v478_v36 }
  0xdf   : > { %v459_v40 = vpop.permute.xlu0 %458  ;;  %966 = vmatpush1.msk.msra.mxu0 %vm441_vm4, %v482_v41 }
  0xe0   : > { %562 = vmatprep.subr.mxu0 %v1403_v7 }
  0xe1   : > { %v461_v42 = vpop.permute.xlu1 %460  ;;  %563 = vmatpush1.msra.mxu0 %v1401_v6 }
  0xe2   : > { %v464_v44 = vsel %vm462_vm10, %v459_v40, %v461_v42 }
  0xe3   : > { %v457_v43 = vpop.permute.xlu0 %456  ;;  %967 = vmatprep.subr.msk.mxu0 %vm414_vm7, %v464_v44 }
  0xe4   : > { %v463_v45 = vsel %vm462_vm10, %v457_v43, %v459_v40 }
  0xe5   : > { %968 = vmatpush1.msk.msra.mxu0 %vm413_vm8, %v463_v45  ;;  %v446_v46 = vpop.permute.xlu1 %445 }
  0xe7   : > { %v448_v47 = vpop.permute.xlu0 %447 }
  0xe8   : > { %v451_v48 = vsel %vm449_vm11, %v446_v46, %v448_v47 }
  0xe9   : > { %969 = vmatprep.subr.msk.mxu0 %vm442_vm3, %v451_v48  ;;  %v444_v49 = vpop.permute.xlu1 %443 }
  0xea   : > { %v450_v51 = vsel %vm449_vm11, %v444_v49, %v446_v46 }
  0xeb   : > { %v517_v50 = vpop.permute.xlu0 %516  ;;  %970 = vmatpush1.msk.msra.mxu0 %vm441_vm4, %v450_v51 }
  0xed   : > { %v519_v52 = vpop.permute.xlu1 %518 }
  0xee   : > { %v522_v54 = vsel %vm520_vm12, %v517_v50, %v519_v52 }
  0xef   : > { %v515_v53 = vpop.permute.xlu0 %514  ;;  %568 = vmatprep.subr.mxu0 %v522_v54 }
  0xf0   : > { %v521_v55 = vsel %vm520_vm12, %v515_v53, %v517_v50 }
  0xf1   : > { %569 = vmatpush1.msra.mxu0 %v521_v55  ;;  %v421_v56 = vpop.permute.xlu1 %420 }
  0xf3   : > { %v423_v57 = vpop.permute.xlu0 %422 }
  0xf4   : > { %v426_v58 = vsel %vm424_vm13, %v421_v56, %v423_v57 }
  0xf5   : > { %971 = vmatprep.subr.msk.mxu0 %vm414_vm7, %v426_v58  ;;  %v419_v59 = vpop.permute.xlu1 %418 }
  0xf6   : > { %v425_v61 = vsel %vm424_vm13, %v419_v59, %v421_v56 }
  0xf7   : > { %972 = vmatpush1.msk.msra.mxu0 %vm413_vm8, %v425_v61 }
  0xf8   : > { %973 = vmatmul.mubr.msk.f32.vlgmr.msra.gmra.mxu0 %vm536_vm14, %v397_v60 }
 0x100   : > { %v614_v62 = vpop.permute.xlu0 %613 }
 0x102   : > { %v621_v1 = vpop.permute.xlu1 %620 }
 0x104   : > { %v713_v14 = vpop.permute.xlu0 %712 }
 0x106   : > { %v735_v13 = vpop.permute.xlu1 %734 }
 0x108   : > { %v701_v16 = vpop.permute.xlu0 %700 }
 0x10a   : > { %v689_v15 = vpop.permute.xlu1 %688 }
 0x10c   : > { %v655_v18 = vpop.permute.xlu0 %654 }
 0x10e   : > { %v667_v17 = vpop.permute.xlu1 %666 }
 0x1b8   : > { %v606_v63 = vpop.f32.mrf.mxu0 }
 0x1b9   : > { %v616_v2 = vmul.f32 %v614_v62, %v606_v63 }
 0x1ba   : > { %v608_v3 = vpop.f32.mrf.mxu0 }
 0x1bb   : > { %v623_v4 = vadd.f32 %v621_v1, %v616_v2  ;;  %v617_v5 = vmul.f32 %v614_v62, %v608_v3 }
 0x1bd   : > { %vm625_vm15 = vcmp.ge.f32.partialorder %v623_v4, 0.0  ;;  %v627_v6 = vmul.f32 0.2, %v623_v4  ;;  %v624_v7 = vadd.f32 %v621_v1, %v617_v5 }
 0x1bf   : > { %v1525_v8 = vsel %vm625_vm15, %v623_v4, %v627_v6  ;;  %vm626_vm0 = vcmp.ge.f32.partialorder %v624_v7, 0.0  ;;  %v628_v9 = vmul.f32 0.2, %v624_v7 }
 0x1c0   : > { %631 = vst [vmem:[#allocation2 + $0x10] sm:$0xff] %v1525_v8  ;;  %730 = vrot.lane.b32.xlu0 %v1525_v8, %s1196_s15  ;;  %708 = vrot.lane.b32.xlu1 %v1525_v8, %s1193_s17 }
 0x1c1   : > { %v630_v10 = vsel %vm626_vm0, %v624_v7, %v628_v9 }
 0x1c2   : > { %632 = vst [vmem:[#allocation2 + $0x18] sm:$0xff] %v630_v10 }
 0x1c4   : > { %684 = vrot.lane.b32.xlu0 %v1525_v8, %s1197_s25  ;;  %696 = vrot.lane.b32.xlu1 %v1525_v8, %s1194_s19 }
 0x1c8   : > { %656 = vrot.lane.b32.xlu0 %v1525_v8, %s1199_s23  ;;  %668 = vrot.lane.b32.xlu1 %v1525_v8, %s1198_s18 }
 0x1cc   : > { %722 = vrot.lane.b32.xlu1 %v1525_v8, %s1200_s14  ;;  %732 = vrot.lane.b32.xlu0 %v630_v10, %s1196_s15  ;;  %s1202_s15 = smov [#allocation8]  }
 0x1d0   : > { %644 = vrot.lane.b32.xlu0 %v1525_v8, %s1201_s20  ;;  %710 = vrot.lane.b32.xlu1 %v630_v10, %s1193_s17 }
 0x1d4   : > { %686 = vrot.lane.b32.xlu0 %v630_v10, %s1197_s25  ;;  %698 = vrot.lane.b32.xlu1 %v630_v10, %s1194_s19 }
 0x1d8   : > { %720 = vrot.lane.b32.xlu1 %v1192_v0, %s1200_s14  ;;  %670 = vrot.lane.b32.xlu0 %v630_v10, %s1198_s18 }
 0x1dc   : > { %658 = vrot.lane.b32.xlu1 %v630_v10, %s1199_s23  ;;  %724 = vrot.lane.b32.xlu0 %v630_v10, %s1200_s14  ;;  %s994_s14 = sshll.u32 %s1274_s13, 7  ;;  %s1124_s13 = sshll.u32 %s1202_s15, 4  ;;  %s1125_s13 = int_to_ptr.vmem [resolvable:$false] %s1124_s13 }
 0x1dd   : > { %s852_s27 = scalar_lea.hbm %s1653_s9, %s994_s14 }
 0x1e0   : > { %646 = vrot.lane.b32.xlu1 %v630_v10, %s1201_s20  ;;  %642 = vrot.lane.b32.xlu0 %v1192_v0, %s1201_s20  ;;  %s376_s20 = scalar_lea.vmem [#allocation8], %s957_s11  ;;  %s1126_s11 = scalar_lea.vmem %s1125_s13, 256 }
 0x1e1   : > { %s854_s28 = sshll.u32 %s376_s20, 4  ;;  %s855_s28 = int_to_ptr.vmem [resolvable:$true] %s854_s28 }
 0x1e2   : > { %s1120_s22 = scalar_lea.vmem %s855_s28, 128  ;;  %p1127_p2 = scmp.lt.s32.totalorder %s855_s28, %s1125_s13 }
 0x1e3   : > { %p1121_p9 = scmp.ne.s32.totalorder %s855_s28, %s1120_s22  ;;  %p1128_p0 = scmp.lt.s32.totalorder %s1126_s11, %s1120_s22 }
 0x1e4   : > { %816 = vperm.xlu1 %1063, %v634_v11   ;;  %823 = vperm.xlu0 %1062, %v635_v12  }
 0x1e5   : > { %p1122_p13 = pnand %p1121_p9, %p1678_p11  ;;  %p1129_p3 = por %p1128_p0, %p1127_p2 }
 0x1e7   : > { %p1123_p1 = pneg %p1122_p13 }
 0x1e9   : > { %p1130_p12 = pnand %p1129_p3, %p1123_p1 }
 0x232   : > { %v731_v21 = vpop.permute.xlu0 %730  ;;  %v709_v22 = vpop.permute.xlu1 %708 }
 0x236   : > { %v685_v23 = vpop.permute.xlu0 %684  ;;  %v697_v0 = vpop.permute.xlu1 %696 }
 0x23a   : > { %v657_v24 = vpop.permute.xlu0 %656  ;;  %v669_v25 = vpop.permute.xlu1 %668 }
 0x23b   : > { %v672_v45 = vsel %vm462_vm10, %v667_v17, %v669_v25  ;;  %v660_v49 = vsel %vm449_vm11, %v655_v18, %v657_v24 }
 0x23e   : > { %v723_v26 = vpop.permute.xlu1 %722  ;;  %v733_v27 = vpop.permute.xlu0 %732 }
 0x23f   : > { %v737_v34 = vsel %vm531_vm5, %v733_v27, %v735_v13  ;;  %v736_v37 = vsel %vm531_vm5, %v731_v21, %v733_v27 }
 0x242   : > { %v645_v29 = vpop.permute.xlu0 %644  ;;  %v711_v31 = vpop.permute.xlu1 %710 }
 0x243   : > { %v715_v32 = vsel %vm507_vm1, %v711_v31, %v713_v14  ;;  %v714_v33 = vsel %vm507_vm1, %v709_v22, %v711_v31 }
 0x244   : > { %974 = vmatprep.subr.msk.mxu1 %vm442_vm3, %v715_v32 }
 0x245   : > { %975 = vmatpush1.msk.msra.mxu1 %vm441_vm4, %v714_v33 }
 0x246   : > { %v687_v35 = vpop.permute.xlu0 %686  ;;  %759 = vmatprep.subr.mxu1 %v737_v34  ;;  %v699_v36 = vpop.permute.xlu1 %698 }
 0x247   : > { %v702_v38 = vsel %vm494_vm6, %v697_v0, %v699_v36  ;;  %v703_v39 = vsel %vm494_vm6, %v699_v36, %v701_v16  ;;  %760 = vmatpush1.msra.mxu1 %v736_v37  ;;  %v691_v40 = vsel %vm481_vm9, %v687_v35, %v689_v15  ;;  %v690_v41 = vsel %vm481_vm9, %v685_v23, %v687_v35 }
 0x248   : > { %976 = vmatprep.subr.msk.mxu1 %vm414_vm7, %v703_v39 }
 0x249   : > { %977 = vmatpush1.msk.msra.mxu1 %vm413_vm8, %v702_v38 }
 0x24a   : > { %978 = vmatprep.subr.msk.mxu1 %vm442_vm3, %v691_v40  ;;  %v721_v42 = vpop.permute.xlu1 %720  ;;  %v671_v43 = vpop.permute.xlu0 %670 }
 0x24b   : > { %979 = vmatpush1.msk.msra.mxu1 %vm441_vm4, %v690_v41  ;;  %v673_v44 = vsel %vm462_vm10, %v669_v25, %v671_v43  ;;  %v726_v53 = vsel %vm520_vm12, %v721_v42, %v723_v26 }
 0x24c   : > { %765 = vmatprep.subr.mxu1 %v630_v10 }
 0x24d   : > { %766 = vmatpush1.msra.mxu1 %v1525_v8 }
 0x24e   : > { %v659_v46 = vpop.permute.xlu1 %658  ;;  %v725_v47 = vpop.permute.xlu0 %724  ;;  %980 = vmatprep.subr.msk.mxu1 %vm414_vm7, %v673_v44 }
 0x24f   : > { %v661_v48 = vsel %vm449_vm11, %v657_v24, %v659_v46  ;;  %981 = vmatpush1.msk.msra.mxu1 %vm413_vm8, %v672_v45  ;;  %v727_v50 = vsel %vm520_vm12, %v723_v26, %v725_v47 }
 0x250   : > { %982 = vmatprep.subr.msk.mxu1 %vm442_vm3, %v661_v48 }
 0x251   : > { %983 = vmatpush1.msk.msra.mxu1 %vm441_vm4, %v660_v49 }
 0x252   : > { %v647_v51 = vpop.permute.xlu1 %646  ;;  %v643_v52 = vpop.permute.xlu0 %642  ;;  %771 = vmatprep.subr.mxu1 %v727_v50 }
 0x253   : > { %v649_v54 = vsel %vm424_vm13, %v645_v29, %v647_v51  ;;  %v648_v55 = vsel %vm424_vm13, %v643_v52, %v645_v29  ;;  %772 = vmatpush1.msra.mxu1 %v726_v53 }
 0x254   : > { %984 = vmatprep.subr.msk.mxu1 %vm414_vm7, %v649_v54 }
 0x255   : > { %985 = vmatpush1.msk.msra.mxu1 %vm413_vm8, %v648_v55 }
 0x256   : > { %986 = vmatmul.mubr.msk.f32.vlgmr.msra.gmra.mxu1 %vm536_vm14, %v633_v19 }
 0x25f   : > { %v817_v20 = vpop.permute.xlu1 %816  ;;  %v824_v58 = vpop.permute.xlu0 %823 }
 0x316   : > { %v809_v56 = vpop.f32.mrf.mxu1 }
 0x317   : > { %v819_v57 = vmul.f32 %v817_v20, %v809_v56 }
 0x318   : > { %v811_v59 = vpop.f32.mrf.mxu1 }
 0x319   : > { %v826_v60 = vadd.f32 %v824_v58, %v819_v57  ;;  %v820_v61 = vmul.f32 %v817_v20, %v811_v59 }
 0x31b   : > { %v830_v62 = vmul.f32 0.2, %v826_v60  ;;  %v827_v63 = vadd.f32 %v824_v58, %v820_v61  ;;  %vm828_vm1 = vcmp.ge.f32.partialorder %v826_v60, 0.0 }
 0x31d   : > { %vm829_vm2 = vcmp.ge.f32.partialorder %v827_v63, 0.0  ;;  %v831_v28 = vmul.f32 0.2, %v827_v63  ;;  %v832_v30 = vsel %vm828_vm1, %v826_v60, %v830_v62 }
 0x31f   : > { %v833_v1 = vsel %vm829_vm2, %v827_v63, %v831_v28 }
 0x320   : > { %v836_v2 = vcombine.low %v832_v30, %v833_v1 }
 0x322   : > { %838 = vst [vmem:[%s376_s20] sm:$0xff] %v836_v2 }
 0x323   : > { %1133 = shalt.err (!%p1130_p12)
}
 0x324   : > { %s1134_s17 = scalar_lea.hbm %s852_s27, 128  ;;  %s1138_s19 = scalar_lea.hbm %s1653_s9, 256 }
 0x325   : > { %p1135_p5 = scmp.ne.s32.totalorder %s852_s27, %s1134_s17  ;;  %p1139_p6 = scmp.lt.s32.totalorder %s852_s27, %s1653_s9 }
 0x326   : > { %p1140_p4 = scmp.lt.s32.totalorder %s1138_s19, %s1134_s17 }
 0x327   : > { %p1136_p7 = pnand %p1135_p5, %p1678_p11 }
 0x328   : > { %p1141_p8 = por %p1140_p4, %p1139_p6 }
 0x329   : > { %p1137_p10 = pneg %p1136_p7 }
 0x32b   : > { %p1142_p9 = pnand %p1141_p8, %p1137_p10 }
 0x32d   : > { %1145 = shalt.err (!%p1142_p9)
}
 0x32e   : > { %1001 = dma.vmem_to_hbm [thread:$0]  (%p1678_p11), %s855_s28, 128, %s852_s27, %s840_s21  }
 0x32f PF: > { %s866_s14 = sand.u32 1, %s1176_s30   ;;  %p1679_p13 = scmp.ne.s32.totalorder %s1664_s16, 0 }
 0x330   : > { %p1680_p1 = scmp.ge.s32.totalorder %s1188_s12, 2  ;;  %s867_s20 = scalar_lea.sflag [#allocation5], %s866_s14 }
 0x332   : > { %p1012_p2 = pnand %p1680_p1, %p1679_p13 }
 0x334   : > { %p1013_p0 = pneg %p1012_p2 }
 0x336   : > { %1171 = dma.done.wait (%p1013_p0), %s867_s20, 128  }
 0x337   : > { %1173 = vsyncadd (%p1013_p0), %s867_s20, 4294967168  ;;  %s1681_s12 = sld [smem:[#allocation13_spill]]  ;;  %s1684_s30 = smov %s1180_s10 }
 0x338   : > { %s1682_s24 = sld [smem:[#allocation12_spill]] }
 0x339   : > { %s1683_s11 = sld [smem:[#allocation14_spill]] }
 0x33d   : > { %p23_p3 = scmp.ge.s32.totalorder %s1681_s12, 4  }
 0x33e   : > { %s1685_s10 = smov %s1682_s24 }
 0x33f   :  { %25 = sbr.rel (!%p23_p3) target bundleno = 8 (0x8), region = 109 }
 0x344   :  { %872 = vsyncpa [#allocation4], 1 }
 0x345   :  { %874 = vsyncpa [#allocation4 + $0x1], 1 }
 0x346   :  { %875 = vsyncpa [#allocation7], 1 }
 0x347   :  { %877 = vsyncpa [#allocation7 + $0x1], 1 }
 0x348   :  { %878 = vsyncpa [#allocation5], 1 }
 0x349   :  { %880 = vsyncpa [#allocation5 + $0x1], 1 }

</bundles_post_ra>
